<compile_context>
chip_gen: v7x
topology: tpu7x:2x2x1
jax: 0.10.0
libtpu: 0.0.40
codegen_flags: <defaults>
</compile_context>

<pallas_src>
import numpy as np
import jax
import jax.numpy as jnp
from jax.experimental import pallas as pl
from jax.experimental.pallas import tpu as pltpu


def _pair_rmse_kernel(warp_ref, tgt_ref, psqrt_ref):
    """One grid step: `bm` warped source rows vs the FULL target batch, one N tile.

    warp_ref  : (3, bm, nt)   coordinate-major warped source rows
    tgt_ref   : (3, bs, nt)   coordinate-major full target batch (one N tile)
    psqrt_ref : (bm, 128)     lane-folded  sum_{b, n in tile} ||w_i(n)-t_b(n)||
    """
    _, bm, nt = warp_ref.shape
    bs = tgt_ref.shape[1]
    n_fold = nt // 128

    # Warp slabs are reused across the whole target-batch loop: hoist once.
    w0 = warp_ref[0]                                   # (bm, nt)
    w1 = warp_ref[1]
    w2 = warp_ref[2]

    acc = jnp.zeros((bm, 128), jnp.float32)
    for b in range(bs):                                # bs is small & static: unrolled
        # TODO(synk): the review suggested a stride-0 pl.ds sublane-broadcast
        # load here, but jax's Slice requires stride >= 1; rely on the
        # (1, nt) -> (bm, nt) jnp broadcast in the subtraction instead.
        t0 = tgt_ref[0, pl.ds(b, 1), :]                # (1, nt)
        t1 = tgt_ref[1, pl.ds(b, 1), :]
        t2 = tgt_ref[2, pl.ds(b, 1), :]
        d0 = w0 - t0
        d1 = w1 - t1
        d2 = w2 - t2
        r = jnp.sqrt(d0 * d0 + d1 * d1 + d2 * d2)      # (bm, nt)  EUP sqrt stream
        # Lane-fold nt -> 128 with vreg-aligned slice adds (keeps acc tiny and
        # cuts the output writeback by nt/128).
        f = r[:, 0:128]
        for k in range(1, n_fold):
            f = f + r[:, k * 128:(k + 1) * 128]
        acc = acc + f
    psqrt_ref[...] = acc                               # single dense (bm, 128) store


def transformation_loss(trans, gt_trans, src_keypts, tgt_keypts, probs,
                        re_thre=15.0, te_thre=30.0):
    bs, n_corr, _ = src_keypts.shape

    trans = trans.astype(jnp.float32)
    gt_trans = gt_trans.astype(jnp.float32)
    src = src_keypts.astype(jnp.float32)
    tgt = tgt_keypts.astype(jnp.float32)
    probs = probs.astype(jnp.float32)

    R = trans[:, :3, :3]
    t = trans[:, :3, 3]
    gR = gt_trans[:, :3, :3]
    gt_t = gt_trans[:, :3, 3]

    # ---- tiny per-batch scalar stats: plain JAX (O(bs)) ----------------------
    # trace(R^T @ gt_R) == sum(R * gt_R)
    re_cos = jnp.clip((jnp.sum(R * gR, axis=(1, 2)) - 1.0) * 0.5, -1.0, 1.0)
    # TODO(synk): arccos has no guaranteed Mosaic lowering; applied on bs scalars here.
    re = jnp.arccos(re_cos) * (180.0 / np.pi)
    te = jnp.sqrt(jnp.sum((t - gt_t) ** 2, axis=-1)) / 10.0
    n_inl = jnp.sum((probs > 0.0).astype(jnp.float32), axis=-1)

    # ---- warp src keypoints, emitted directly coordinate-major --------------
    # warp_cbn[c, b, n] = sum_j R[b,c,j] * src[b,n,j] + t[b,c]
    warp_cbn = jnp.einsum('bcj,bnj->cbn', R, src) + jnp.transpose(t)[:, :, None]
    tgt_cbn = jnp.transpose(tgt, (2, 0, 1))                       # (3, bs, N)

    denom = float(bs * n_corr)

    # ---- squared-distance loss via target moments (O(bs*N), no kernel output)
    # sum_{b,n} ||w_i(n) - t_b(n)||^2 = sum_n [ bs*||w_i||^2 - 2 w_i.S + Q ]
    S = jnp.sum(tgt_cbn, axis=1)                                  # (3, N)
    q_sum = jnp.sum(tgt_cbn * tgt_cbn)                            # scalar
    wsq_sum = jnp.sum(warp_cbn * warp_cbn, axis=(0, 2))           # (bs,)
    cross_sum = jnp.einsum('cbn,cn->b', warp_cbn, S)              # (bs,)
    loss_i = (bs * wsq_sum - 2.0 * cross_sum + q_sum) / denom     # (bs,)

    # ---- batch-row blocking (warp rows) and lane tiling ----------------------
    if bs <= 16:
        bm = bs                      # block dim == full dim: no 8-divisibility needed
        bs_pad = bs
    else:
        bm = 16                      # multiple of 8; amortizes ~0.35us/step overhead
        bs_pad = pl.cdiv(bs, bm) * bm
    n_bb = bs_pad // bm

    n_pad = pl.cdiv(n_corr, 128) * 128
    # Cap bm*nt so the hoisted warp slabs (3*bm*nt f32) stay register-friendly.
    nt_cap = max(128, min(2048, (16384 // max(bm, 1)) // 128 * 128))
    nt = min(n_pad, nt_cap)
    if n_pad > 128 and n_pad // nt < 2:
        # Prefer >=2 N tiles so a 2-TensorCore chip (v7x) can split along N.
        nt = max(128, (n_pad // 2) // 128 * 128)
    n_pad = pl.cdiv(n_pad, nt) * nt
    n_nt = n_pad // nt

    # Zero padding contributes exactly 0 to the sqrt sums (warp and tgt both
    # zero there); padded warp batch rows are sliced off below.
    warp_p = jnp.pad(warp_cbn, ((0, 0), (0, bs_pad - bs), (0, n_pad - n_corr)))
    tgt_p = jnp.pad(tgt_cbn, ((0, 0), (0, 0), (0, n_pad - n_corr)))

    cost = pl.CostEstimate(
        flops=int(9 * bs_pad * bs * n_pad),
        transcendentals=int(bs_pad * bs * n_pad),
        bytes_accessed=int(4 * (3 * bs_pad * n_pad + 3 * bs * n_pad
                                + bs_pad * n_nt * 128)))

    psqrt = pl.pallas_call(
        _pair_rmse_kernel,
        out_shape=jax.ShapeDtypeStruct((bs_pad, n_nt * 128), jnp.float32),
        grid_spec=pltpu.PrefetchScalarGridSpec(
            num_scalar_prefetch=0,
            # N tiles OUTER, batch-row blocks INNER: the constant-index tgt
            # tile is fetched once per N tile (not once per batch block).
            grid=(n_nt, n_bb),
            in_specs=[
                pl.BlockSpec((3, bm, nt), lambda nj, g: (0, g, nj)),  # warp rows
                pl.BlockSpec((3, bs, nt), lambda nj, g: (0, 0, nj)),  # full tgt
            ],
            out_specs=pl.BlockSpec((bm, 128), lambda nj, g: (g, nj)),
        ),
        # Each output block is written exactly once -> both axes independent.
        # TODO(synk): on v7x, pltpu.CORE_PARALLEL on the N axis would shard the
        # two TensorCores without duplicating the tgt DMA; kept "parallel" for
        # portability across v5e/v6e.
        compiler_params=pltpu.CompilerParams(
            dimension_semantics=("parallel", "parallel")),
        cost_estimate=cost,
    )(warp_p, tgt_p)

    # finish the tiny lane reduction + mean with the TRUE bs*N denominator
    rmse_i = jnp.sum(psqrt[:bs], axis=-1) / denom                 # (bs,)

    recall = jnp.sum(((te < te_thre) & (re < re_thre)).astype(jnp.float32)) \
        * 100.0 / bs
    loss = jnp.sum(jnp.where(n_inl >= 1.0, loss_i, 0.0)) / bs
    return (loss, recall, jnp.sum(re) / bs, jnp.sum(te) / bs,
            jnp.sum(rmse_i) / bs)


# ------------------------- pure-JAX reference -------------------------------
def transformation_loss_ref(trans, gt_trans, src_keypts, tgt_keypts, probs,
                            re_thre=15.0, te_thre=30.0):
    bs = trans.shape[0]
    loss = RE = TE = RMSE = recall = 0.0
    for i in range(bs):
        R, t = trans[i, :3, :3], trans[i, :3, 3]
        gR, gt = gt_trans[i, :3, :3], gt_trans[i, :3, 3]
        re = jnp.arccos(jnp.clip((jnp.trace(R.T @ gR) - 1.0) / 2.0, -1.0, 1.0)) \
            * 180.0 / np.pi
        te = jnp.sqrt(jnp.sum((t - gt) ** 2)) / 10.0
        warp = src_keypts[i] @ R.T + t
        diff = warp[None, :, :] - tgt_keypts        # broadcast vs full batch
        rmse = jnp.mean(jnp.linalg.norm(diff, axis=-1))
        recall = recall + jnp.where((te < te_thre) & (re < re_thre), 1.0, 0.0)
        RE, TE, RMSE = RE + re, TE + te, RMSE + rmse
        has = jnp.sum(probs[i] > 0) >= 1
        loss = loss + jnp.where(has, jnp.mean(jnp.sum(diff ** 2, axis=-1)), 0.0)
    return loss / bs, recall * 100.0 / bs, RE / bs, TE / bs, RMSE / bs


# ------------------------------ test setup ----------------------------------
def _rot(axis, angle):
    axis = np.asarray(axis, np.float64)
    axis = axis / np.linalg.norm(axis)
    K = np.array([[0, -axis[2], axis[1]],
                  [axis[2], 0, -axis[0]],
                  [-axis[1], axis[0], 0]], np.float64)
    return (np.eye(3) + np.sin(angle) * K
            + (1.0 - np.cos(angle)) * (K @ K)).astype(np.float32)


def _make_se3(axis, angle, tvec):
    T = np.eye(4, dtype=np.float32)
    T[:3, :3] = _rot(axis, angle)
    T[:3, 3] = np.asarray(tvec, np.float32)
    return T


if __name__ == "__main__":
    bs, n_corr = 2, 16

    key = jax.random.PRNGKey(0)
    k1, k2, k3 = jax.random.split(key, 3)

    trans = jnp.asarray(np.stack([
        _make_se3([0.0, 0.0, 1.0], 0.10, [0.5, -0.3, 0.2]),
        _make_se3([0.0, 1.0, 0.0], -0.05, [1.0, 0.2, -0.4]),
    ]))
    gt_trans = jnp.asarray(np.stack([
        _make_se3([0.0, 0.0, 1.0], 0.12, [0.55, -0.25, 0.18]),
        _make_se3([1.0, 1.0, 0.0], 0.20, [0.80, 0.10, -0.30]),
    ]))

    src_keypts = jax.random.normal(k1, (bs, n_corr, 3), dtype=jnp.float32)
    tgt_keypts = jax.random.normal(k2, (bs, n_corr, 3), dtype=jnp.float32)
    probs = jax.random.uniform(k3, (bs, n_corr), dtype=jnp.float32) - 0.3

    out = transformation_loss(trans, gt_trans, src_keypts, tgt_keypts, probs)
    out = jax.block_until_ready(out)

    ref = transformation_loss_ref(trans, gt_trans, src_keypts, tgt_keypts, probs)
    for got, want in zip(out, ref):
        np.testing.assert_allclose(np.asarray(got), np.asarray(want),
                                   rtol=2e-3, atol=2e-3)

    print("KERNEL_OK")
</pallas_src>

<mosaic_0001>
module attributes {stable_mosaic.version = 11 : i64} {
  func.func @_pair_rmse_kernel(%arg0: i32, %arg1: i32, %arg2: memref<3x2x128xf32, #tpu.memory_space<vmem>>, %arg3: memref<3x2x128xf32, #tpu.memory_space<vmem>>, %arg4: memref<2x128xf32, #tpu.memory_space<vmem>>) attributes {dimension_semantics = [#tpu.dimension_semantics<parallel>, #tpu.dimension_semantics<parallel>], iteration_bounds = array<i64: 1, 1>, scalar_prefetch = 0 : i64, scratch_operands = 0 : i64, tpu.core_type = #tpu.core_type<tc>, window_params = [{transform_indices = @transform_0, window_bounds = array<i64: 3, 2, 128>}, {transform_indices = @transform_1, window_bounds = array<i64: 3, 2, 128>}, {transform_indices = @transform_2, window_bounds = array<i64: 2, 128>}]} {
    %c0 = arith.constant 0 : index
    %c0_0 = arith.constant 0 : index
    %c0_1 = arith.constant 0 : index
    %0 = vector.load %arg2[%c0, %c0_0, %c0_1] : memref<3x2x128xf32, #tpu.memory_space<vmem>>, vector<1x2x128xf32>
    %1 = vector.shape_cast %0 : vector<1x2x128xf32> to vector<2x128xf32>
    %c1 = arith.constant 1 : index
    %c0_2 = arith.constant 0 : index
    %c0_3 = arith.constant 0 : index
    %2 = vector.load %arg2[%c1, %c0_2, %c0_3] : memref<3x2x128xf32, #tpu.memory_space<vmem>>, vector<1x2x128xf32>
    %3 = vector.shape_cast %2 : vector<1x2x128xf32> to vector<2x128xf32>
    %c2 = arith.constant 2 : index
    %c0_4 = arith.constant 0 : index
    %c0_5 = arith.constant 0 : index
    %4 = vector.load %arg2[%c2, %c0_4, %c0_5] : memref<3x2x128xf32, #tpu.memory_space<vmem>>, vector<1x2x128xf32>
    %5 = vector.shape_cast %4 : vector<1x2x128xf32> to vector<2x128xf32>
    %cst = arith.constant 0.000000e+00 : f32
    %6 = vector.broadcast %cst : f32 to vector<2x128xf32>
    %c0_6 = arith.constant 0 : index
    %c0_7 = arith.constant 0 : index
    %c0_8 = arith.constant 0 : index
    %7 = vector.load %arg3[%c0_6, %c0_7, %c0_8] : memref<3x2x128xf32, #tpu.memory_space<vmem>>, vector<1x1x128xf32>
    %8 = vector.shape_cast %7 : vector<1x1x128xf32> to vector<1x128xf32>
    %c1_9 = arith.constant 1 : index
    %c0_10 = arith.constant 0 : index
    %c0_11 = arith.constant 0 : index
    %9 = vector.load %arg3[%c1_9, %c0_10, %c0_11] : memref<3x2x128xf32, #tpu.memory_space<vmem>>, vector<1x1x128xf32>
    %10 = vector.shape_cast %9 : vector<1x1x128xf32> to vector<1x128xf32>
    %c2_12 = arith.constant 2 : index
    %c0_13 = arith.constant 0 : index
    %c0_14 = arith.constant 0 : index
    %11 = vector.load %arg3[%c2_12, %c0_13, %c0_14] : memref<3x2x128xf32, #tpu.memory_space<vmem>>, vector<1x1x128xf32>
    %12 = vector.shape_cast %11 : vector<1x1x128xf32> to vector<1x128xf32>
    %13 = vector.broadcast %8 : vector<1x128xf32> to vector<2x128xf32>
    %14 = arith.subf %1, %13 : vector<2x128xf32>
    %15 = vector.broadcast %10 : vector<1x128xf32> to vector<2x128xf32>
    %16 = arith.subf %3, %15 : vector<2x128xf32>
    %17 = vector.broadcast %12 : vector<1x128xf32> to vector<2x128xf32>
    %18 = arith.subf %5, %17 : vector<2x128xf32>
    %19 = arith.mulf %14, %14 : vector<2x128xf32>
    %20 = arith.mulf %16, %16 : vector<2x128xf32>
    %21 = arith.addf %19, %20 : vector<2x128xf32>
    %22 = arith.mulf %18, %18 : vector<2x128xf32>
    %23 = arith.addf %21, %22 : vector<2x128xf32>
    %24 = math.sqrt %23 : vector<2x128xf32>
    %25 = arith.addf %6, %24 : vector<2x128xf32>
    %c0_15 = arith.constant 0 : index
    %c1_16 = arith.constant 1 : index
    %c0_17 = arith.constant 0 : index
    %26 = vector.load %arg3[%c0_15, %c1_16, %c0_17] : memref<3x2x128xf32, #tpu.memory_space<vmem>>, vector<1x1x128xf32>
    %27 = vector.shape_cast %26 : vector<1x1x128xf32> to vector<1x128xf32>
    %c1_18 = arith.constant 1 : index
    %c1_19 = arith.constant 1 : index
    %c0_20 = arith.constant 0 : index
    %28 = vector.load %arg3[%c1_18, %c1_19, %c0_20] : memref<3x2x128xf32, #tpu.memory_space<vmem>>, vector<1x1x128xf32>
    %29 = vector.shape_cast %28 : vector<1x1x128xf32> to vector<1x128xf32>
    %c2_21 = arith.constant 2 : index
    %c1_22 = arith.constant 1 : index
    %c0_23 = arith.constant 0 : index
    %30 = vector.load %arg3[%c2_21, %c1_22, %c0_23] : memref<3x2x128xf32, #tpu.memory_space<vmem>>, vector<1x1x128xf32>
    %31 = vector.shape_cast %30 : vector<1x1x128xf32> to vector<1x128xf32>
    %32 = vector.broadcast %27 : vector<1x128xf32> to vector<2x128xf32>
    %33 = arith.subf %1, %32 : vector<2x128xf32>
    %34 = vector.broadcast %29 : vector<1x128xf32> to vector<2x128xf32>
    %35 = arith.subf %3, %34 : vector<2x128xf32>
    %36 = vector.broadcast %31 : vector<1x128xf32> to vector<2x128xf32>
    %37 = arith.subf %5, %36 : vector<2x128xf32>
    %38 = arith.mulf %33, %33 : vector<2x128xf32>
    %39 = arith.mulf %35, %35 : vector<2x128xf32>
    %40 = arith.addf %38, %39 : vector<2x128xf32>
    %41 = arith.mulf %37, %37 : vector<2x128xf32>
    %42 = arith.addf %40, %41 : vector<2x128xf32>
    %43 = math.sqrt %42 : vector<2x128xf32>
    %44 = arith.addf %25, %43 : vector<2x128xf32>
    %c0_24 = arith.constant 0 : index
    %c0_25 = arith.constant 0 : index
    %45 = vector.load %arg4[%c0_24, %c0_25] : memref<2x128xf32, #tpu.memory_space<vmem>>, vector<2x128xf32>
    tpu.vector_store %arg4[%c0_24, %c0_25], %44 {strides = array<i32>} : memref<2x128xf32, #tpu.memory_space<vmem>>, vector<2x128xf32>,
    return
  }
  func.func @transform_0(%arg0: i32, %arg1: i32) -> (i32, i32, i32) {
    %c0_i32 = arith.constant 0 : i32
    %c0_i32_0 = arith.constant 0 : i32
    return %c0_i32, %arg1, %arg0 : i32, i32, i32
  }
  func.func @transform_1(%arg0: i32, %arg1: i32) -> (i32, i32, i32) {
    %c0_i32 = arith.constant 0 : i32
    %c0_i32_0 = arith.constant 0 : i32
    %c0_i32_1 = arith.constant 0 : i32
    return %c0_i32, %c0_i32_0, %arg0 : i32, i32, i32
  }
  func.func @transform_2(%arg0: i32, %arg1: i32) -> (i32, i32) {
    %c0_i32 = arith.constant 0 : i32
    return %arg1, %arg0 : i32, i32
  }
}

</mosaic_0001>

<bundles_post_ra>
// kernel: tpu_custom_call.1
= control target key start
LH: loop header
LB: loop body
LE: loop exit
PB: predicated region body
PF: predicated region fallthrough
CT: control target
= control target key end

     0   :  { %7 = vsyncpa [#allocation3], 0  ;;  %s269_s0 = inlined_call_operand.hbm [shape: f32[3,2,128], index: 0, kind: input, shape index: {}]   ;;  %s270_s1 = inlined_call_operand.hbm [shape: f32[3,2,128], index: 1, kind: input, shape index: {}]   ;;  %s271_s2 = inlined_call_operand.hbm [shape: f32[2,128], index: 2, kind: output, shape index: {}]  }
   0x1   :  { %8 = vsyncpa [#allocation6], 0 }
   0x2   :  { %9 = vsyncpa [#allocation4], 0  ;;  %s213_s9 = smov [#allocation2]   ;;  %s141_s13 = scalar_lea.hbm %s269_s0, 96 }
   0x3   :  { %s15_s10 = sshll.u32 %s213_s9, 4  ;;  %p142_p0 = scmp.ne.s32.totalorder %s269_s0, %s141_s13  ;;  %s16_s10 = int_to_ptr.vmem [resolvable:$true] %s15_s10 }
   0x4   :  { %p145_p1 = scmp.lt.u32.totalorder %s141_s13, %s269_s0 }
   0x6   :  { %p147_p2 = pnand %p145_p1, %p142_p0 }
   0x8   :  { %150 = shalt.err (!%p147_p2)
}
   0x9   :  { %s151_s18 = scalar_lea.vmem %s16_s10, 96  ;;  %p156_p4 = scmp.lt.s32.totalorder %s16_s10, %s16_s10 }
   0xa   :  { %p152_p3 = scmp.ne.s32.totalorder %s16_s10, %s151_s18  ;;  %p157_p5 = scmp.lt.s32.totalorder %s151_s18, %s151_s18 }
   0xc   :  { %p158_p6 = por %p157_p5, %p156_p4 }
   0xe   :  { %p159_p7 = pnand %p158_p6, %p152_p3 }
  0x10   :  { %162 = shalt.err (!%p159_p7)
}
  0x11   :  { %s214_s19 = smov 32   ;;  %s215_s20 = smov 2  }
  0x12   :  { %21 = dma.hbm_to_vmem [thread:$0]  %s269_s0, 96, %s16_s10, [#allocation3], %s214_s19, %s214_s19, %s215_s20  }
  0x13   :  { %s216_s23 = smov [#allocation5]   ;;  %s163_s27 = scalar_lea.hbm %s270_s1, 96 }
  0x14   :  { %s27_s24 = sshll.u32 %s216_s23, 4  ;;  %p164_p8 = scmp.ne.s32.totalorder %s270_s1, %s163_s27  ;;  %s28_s24 = int_to_ptr.vmem [resolvable:$true] %s27_s24 }
  0x15   :  { %p167_p9 = scmp.lt.u32.totalorder %s163_s27, %s270_s1 }
  0x17   :  { %p169_p10 = pnand %p167_p9, %p164_p8 }
  0x19   :  { %172 = shalt.err (!%p169_p10)
}
  0x1a   :  { %s173_s4 = scalar_lea.vmem %s28_s24, 96  ;;  %p178_p12 = scmp.lt.s32.totalorder %s28_s24, %s28_s24 }
  0x1b   :  { %p174_p11 = scmp.ne.s32.totalorder %s28_s24, %s173_s4  ;;  %p179_p13 = scmp.lt.s32.totalorder %s173_s4, %s173_s4 }
  0x1d   :  { %p180_p0 = por %p179_p13, %p178_p12 }
  0x1f   :  { %p181_p1 = pnand %p180_p0, %p174_p11 }
  0x21   :  { %184 = shalt.err (!%p181_p1)
}
  0x22   :  { %33 = dma.hbm_to_vmem [thread:$0]  %s270_s1, 96, %s28_s24, [#allocation6], %s214_s19, %s214_s19, %s215_s20  }
  0x23   :  { %207 = dma.done.wait [#allocation3], 96  }
  0x24   :  { %208 = vsyncadd [#allocation3], 4294967200 }
  0x25   :  { %209 = dma.done.wait [#allocation6], 96  }
  0x26   :  { %210 = vsyncadd [#allocation6], 4294967200  ;;  %v40_v0 = vld [vmem:[#allocation2] sm:$0x3]  ;;  %v42_v1 = vld [vmem:[#allocation2 + $0x2] sm:$0x3] }
  0x27   :  { %v44_v2 = vld [vmem:[#allocation2 + $0x4] sm:$0x3]  ;;  %v126_v3 = vld [vmem:[#allocation5] ss:$0 sm:$0xff]  ;;  %v127_v4 = vld [vmem:[#allocation5 + $0x2] ss:$0 sm:$0xff] }
  0x28   :  { %v128_v5 = vld [vmem:[#allocation5 + $0x4] ss:$0 sm:$0xff]  ;;  %v54_v6 = vsub.f32 %v40_v0, %v126_v3  ;;  %v59_v7 = vsub.f32 %v42_v1, %v127_v4  ;;  %v129_v9 = vld [vmem:[#allocation5 + $0x1] ss:$0 sm:$0xff]  ;;  %v130_v10 = vld [vmem:[#allocation5 + $0x3] ss:$0 sm:$0xff] }
  0x29   :  { %v64_v8 = vsub.f32 %v44_v2, %v128_v5  ;;  %v131_v11 = vld [vmem:[#allocation5 + $0x5] ss:$0 sm:$0xff]  ;;  %v85_v12 = vsub.f32 %v40_v0, %v129_v9  ;;  %v90_v13 = vsub.f32 %v42_v1, %v130_v10  ;;  %s217_s1 = smov [#allocation7]  }
  0x2a   :  { %v95_v14 = vsub.f32 %v44_v2, %v131_v11  ;;  %v65_v15 = vmul.f32 %v54_v6, %v54_v6  ;;  %v66_v16 = vmul.f32 %v59_v7, %v59_v7  ;;  %s116_s6 = sshll.u32 %s217_s1, 4  ;;  %s117_s6 = int_to_ptr.vmem [resolvable:$true] %s116_s6 }
  0x2b   :  { %v68_v17 = vmul.f32 %v64_v8, %v64_v8  ;;  %v96_v18 = vmul.f32 %v85_v12, %v85_v12  ;;  %v97_v19 = vmul.f32 %v90_v13, %v90_v13  ;;  %s185_s7 = scalar_lea.vmem %s117_s6, 32  ;;  %p190_p3 = scmp.lt.s32.totalorder %s117_s6, %s117_s6 }
  0x2c   :  { %v99_v20 = vmul.f32 %v95_v14, %v95_v14  ;;  %v67_v21 = vadd.f32 %v66_v16, %v65_v15  ;;  %p186_p2 = scmp.ne.s32.totalorder %s117_s6, %s185_s7  ;;  %p191_p4 = scmp.lt.s32.totalorder %s185_s7, %s185_s7 }
  0x2d   :  { %v98_v22 = vadd.f32 %v97_v19, %v96_v18 }
  0x2e   :  { %v69_v23 = vadd.f32 %v68_v17, %v67_v21  ;;  %p192_p5 = por %p191_p4, %p190_p3 }
  0x2f   :  { %v100_v24 = vadd.f32 %v99_v20, %v98_v22 }
  0x30   :  { %137 = vrsqrt.f32 %v69_v23  ;;  %vm72_vm0 = vcmp.eq.f32.partialorder %v69_v23, inf  ;;  %v75_v26 = vand.u32 2147483648, %v69_v23  ;;  %vm74_vm1 = vcmp.eq.f32.partialorder %v69_v23, 0.0  ;;  %p193_p6 = pnand %p192_p5, %p186_p2 }
  0x31   :  { %139 = vrsqrt.f32 %v100_v24  ;;  %vm103_vm2 = vcmp.eq.f32.partialorder %v100_v24, inf  ;;  %v106_v29 = vand.u32 2147483648, %v100_v24  ;;  %vm105_vm3 = vcmp.eq.f32.partialorder %v100_v24, 0.0 }
  0x3a   :  { %v138_v25 = vpop.eup %137 }
  0x3b   :  { %v140_v27 = vpop.eup %139  ;;  %v71_v28 = vmul.f32 %v138_v25, %v69_v23 }
  0x3c   :  { %v102_v30 = vmul.f32 %v140_v27, %v100_v24 }
  0x3d   :  { %v73_v31 = vsel %vm72_vm0, %v69_v23, %v71_v28 }
  0x3e   :  { %v76_v32 = vsel %vm74_vm1, %v75_v26, %v73_v31  ;;  %v104_v33 = vsel %vm103_vm2, %v100_v24, %v102_v30 }
  0x3f   :  { %v107_v34 = vsel %vm105_vm3, %v106_v29, %v104_v33 }
  0x40   :  { %v108_v35 = vadd.f32 %v107_v34, %v76_v32 }
  0x42   :  { %109 = vst [vmem:[#allocation7] sm:$0x3] %v108_v35 }
  0x43   :  { %196 = shalt.err (!%p193_p6)
}
  0x44   :  { %s197_s10 = scalar_lea.hbm %s271_s2, 32 }
  0x45   :  { %p198_p7 = scmp.ne.s32.totalorder %s271_s2, %s197_s10  ;;  %p201_p8 = scmp.lt.u32.totalorder %s197_s10, %s271_s2 }
  0x47   :  { %p203_p9 = pnand %p201_p8, %p198_p7 }
  0x49   :  { %206 = shalt.err (!%p203_p9)
}
  0x4a   :  { %119 = dma.vmem_to_hbm [thread:$0]  %s117_s6, 32, %s271_s2, [#allocation4]  }
  0x4b   :  { %211 = dma.done.wait [#allocation4], 32  }
  0x4c   :  { %212 = vsyncadd [#allocation4], 4294967264 }
  0x4d   :  { %123 = vsyncpa [#allocation3], 1 }
  0x4e   :  { %124 = vsyncpa [#allocation6], 1 }
  0x4f   :  { %125 = vsyncpa [#allocation4], 1 }

</bundles_post_ra>
